<compile_context>
chip_gen: v7x
topology: tpu7x:2x2x1
jax: 0.10.0
libtpu: 0.0.40
codegen_flags: <defaults>
</compile_context>

<pallas_src>
import functools
import math

import jax
import jax.numpy as jnp
from jax.experimental import pallas as pl
from jax.experimental.pallas import tpu as pltpu


def _round_up(x, m):
    return ((x + m - 1) // m) * m


# ----------------------------------------------------------------------------
# Kernel 1: tiled matmul with VMEM accumulator.
# ----------------------------------------------------------------------------
def _matmul_kernel(a_ref, b_ref, o_ref, acc_ref):
    @pl.when(pl.program_id(2) == 0)
    def _():
        acc_ref[...] = jnp.zeros_like(acc_ref)

    acc_ref[...] += jnp.dot(a_ref[...], b_ref[...],
                            preferred_element_type=jnp.float32)

    @pl.when(pl.program_id(2) == pl.num_programs(2) - 1)
    def _():
        o_ref[...] = acc_ref[...]


def pallas_matmul(a, b, tm=256, tn=256, tk=512):
    """Tiled f32 matmul.  Tiles sized so f32 double-buffered operands stay small
    (fits v7x's 64 MiB VMEM as well as v6e/v5e); inputs padded to tile multiples."""
    a = a.astype(jnp.float32)
    b = b.astype(jnp.float32)
    M, K = a.shape
    _, N = b.shape
    tm = min(tm, _round_up(M, 8))
    tn = min(tn, _round_up(N, 128))
    tk = min(tk, _round_up(K, 128))
    Mp, Kp, Np = _round_up(M, tm), _round_up(K, tk), _round_up(N, tn)
    if (Mp, Kp) != (M, K):
        a = jnp.pad(a, ((0, Mp - M), (0, Kp - K)))
    if (Kp, Np) != (K, N):
        b = jnp.pad(b, ((0, Kp - K), (0, Np - N)))

    out = pl.pallas_call(
        _matmul_kernel,
        out_shape=jax.ShapeDtypeStruct((Mp, Np), jnp.float32),
        grid=(Mp // tm, Np // tn, Kp // tk),
        in_specs=[pl.BlockSpec((tm, tk), lambda i, j, k: (i, k)),
                  pl.BlockSpec((tk, tn), lambda i, j, k: (k, j))],
        out_specs=pl.BlockSpec((tm, tn), lambda i, j, k: (i, j)),
        scratch_shapes=[pltpu.VMEM((tm, tn), jnp.float32)],
        compiler_params=pltpu.CompilerParams(
            dimension_semantics=("parallel", "parallel", "arbitrary")),
    )(a, b)
    if (Mp, Np) != (M, N):
        out = out[:M, :N]
    return out


# ----------------------------------------------------------------------------
# Kernel 2: fused, batched session attention (generate_hg_emb hot path).
# One grid step processes TB sessions; all matmuls run on the (TB*L, H) slab.
# ----------------------------------------------------------------------------
def _hg_attention_kernel(seq_ref, posw1_ref, sinv_ref, smask_ref, stexp_ref,
                         w1s_ref, w2_ref, w3_ref, b23_ref, ft_ref, o_ref):
    seq = seq_ref[...]                                              # (TB*L, H)
    # tanh(W1 [pos ; seq] + b1): position half precomputed in wrapper (posw1).
    nsh = jnp.tanh(posw1_ref[...] +
                   jnp.dot(seq, w1s_ref[...],
                           preferred_element_type=jnp.float32))     # (TB*L, H)
    # per-session mean via inv-length-scaled pooling matmul
    mean = jnp.dot(sinv_ref[0], seq,
                   preferred_element_type=jnp.float32)              # (TB, H)
    mean_w2 = jnp.dot(mean, w2_ref[...],
                      preferred_element_type=jnp.float32)           # (TB, H)
    # expand per-session mean back to every position of that session
    exp_mean = jnp.dot(stexp_ref[...], mean_w2,
                       preferred_element_type=jnp.float32)          # (TB*L, H)
    temp = jax.nn.sigmoid(
        exp_mean
        + jnp.dot(nsh, w3_ref[...], preferred_element_type=jnp.float32)
        + b23_ref[...])                                             # (TB*L, H)
    alpha = jnp.dot(temp, ft_ref[...],
                    preferred_element_type=jnp.float32)             # (TB*L, 1)
    # masked per-session sum of alpha * nsh via the mask-weighted pooling matrix
    theta = jnp.dot(smask_ref[0], alpha * nsh,
                    preferred_element_type=jnp.float32)             # (TB, H)
    o_ref[...] = theta


def pallas_hg_attention(seq_h, pos_w1, inv_len, masks,
                        w1s, w2t, w3t, b23, ft, tile_b=16):
    B, L, H = seq_h.shape
    TB = B if B <= tile_b else tile_b
    Bp = _round_up(B, TB)
    if Bp != B:
        pad = Bp - B
        seq_h = jnp.pad(seq_h, ((0, pad), (0, 0), (0, 0)))
        inv_len = jnp.pad(inv_len, ((0, pad),), constant_values=1.0)
        masks = jnp.pad(masks, ((0, pad), (0, 0)))
    nt = Bp // TB
    TBL = TB * L

    seq_flat = seq_h.astype(jnp.float32).reshape(nt * TBL, H)

    # Pooling matrices (block-diagonal selectors), built once in the wrapper.
    eye = jnp.eye(TB, dtype=jnp.float32)
    s_ones = jnp.repeat(eye, L, axis=1)                       # (TB, TB*L)
    st_exp = jnp.transpose(s_ones)                            # (TB*L, TB)
    inv_r = inv_len.astype(jnp.float32).reshape(nt, TB)
    s_inv = s_ones[None] * inv_r[:, :, None]                  # (nt, TB, TB*L)
    mask_r = masks.astype(jnp.float32).reshape(nt, TB, L)
    s_mask = (eye[None, :, :, None] * mask_r[:, :, None, :]).reshape(nt, TB, TBL)

    pos_w1_tiled = jnp.tile(pos_w1.astype(jnp.float32), (TB, 1))   # (TB*L, H)

    out = pl.pallas_call(
        _hg_attention_kernel,
        out_shape=jax.ShapeDtypeStruct((Bp, H), jnp.float32),
        grid=(nt,),
        in_specs=[
            pl.BlockSpec((TBL, H), lambda t: (t, 0)),          # seq slab (per tile)
            pl.BlockSpec((TBL, H), lambda t: (0, 0)),          # pos@w1p+b1 (shared)
            pl.BlockSpec((1, TB, TBL), lambda t: (t, 0, 0)),   # inv-len pooling
            pl.BlockSpec((1, TB, TBL), lambda t: (t, 0, 0)),   # mask pooling
            pl.BlockSpec((TBL, TB), lambda t: (0, 0)),         # expansion (shared)
            pl.BlockSpec((H, H), lambda t: (0, 0)),            # w1 (seq half)
            pl.BlockSpec((H, H), lambda t: (0, 0)),            # w2
            pl.BlockSpec((H, H), lambda t: (0, 0)),            # w3
            pl.BlockSpec((1, H), lambda t: (0, 0)),            # b2 + b3
            pl.BlockSpec((H, 1), lambda t: (0, 0)),            # f_T
        ],
        out_specs=pl.BlockSpec((TB, H), lambda t: (t, 0)),
        compiler_params=pltpu.CompilerParams(dimension_semantics=("parallel",)),
    )(seq_flat, pos_w1_tiled, s_inv, s_mask, st_exp, w1s, w2t, w3t, b23, ft)
    return out[:B]


# ----------------------------------------------------------------------------
# Kernel 3: fused line-graph channel (diag-degree scale + conv chain + layer mean).
# ----------------------------------------------------------------------------
def _line_conv_kernel(deg_ref, adj_ref, x0_ref, o_ref, *, steps):
    da = deg_ref[...] * adj_ref[...]          # D @ A with diagonal D == row scale
    x = x0_ref[...]
    acc = x
    for _ in range(steps):                    # small static step count
        x = jnp.dot(da, x, preferred_element_type=jnp.float32)
        acc = acc + x
    o_ref[...] = acc * (1.0 / float(steps + 1))


def pallas_line_conv(deg_diag, line_adj, sess0, steps):
    # TODO(synk): for very large batch sizes the (B, B) adjacency would need a
    # tiled/grid variant; at session-batch scale it fits VMEM comfortably.
    B, H = sess0.shape
    return pl.pallas_call(
        functools.partial(_line_conv_kernel, steps=steps),
        out_shape=jax.ShapeDtypeStruct((B, H), jnp.float32),
    )(deg_diag.reshape(B, 1).astype(jnp.float32),
      line_adj.astype(jnp.float32),
      sess0.astype(jnp.float32))


# ----------------------------------------------------------------------------
# Kernel 4: SSL contrastive loss.
# ----------------------------------------------------------------------------
def _ssl_kernel(x_ref, xs_ref, y_ref, o_ref):
    x = x_ref[...]
    xs = xs_ref[...]
    y = y_ref[...]
    pos = jnp.sum(x * y, axis=1, keepdims=True)     # (B, 1)
    neg = jnp.sum(xs * y, axis=1, keepdims=True)    # (B, 1)
    term = (-jnp.log(1e-8 + jax.nn.sigmoid(pos))
            - jnp.log(1e-8 + (1.0 - jax.nn.sigmoid(neg))))
    o_ref[...] = jnp.sum(term, axis=0, keepdims=True)   # (1, 1)


def pallas_ssl_loss(hg_sess, hg_sess_shuffled, line_sess):
    return pl.pallas_call(
        _ssl_kernel,
        out_shape=jax.ShapeDtypeStruct((1, 1), jnp.float32),
    )(hg_sess.astype(jnp.float32),
      hg_sess_shuffled.astype(jnp.float32),
      line_sess.astype(jnp.float32))[0, 0]


# ----------------------------------------------------------------------------
# Full DHCN forward.
# ----------------------------------------------------------------------------
def dhcn_forward(params, session_info, reversed_info, sessions_len, masks,
                 line_adj, degree, hg_adj, hg_steps, line_steps, beta,
                 perm_rows, perm_cols):
    items_emb = params["items_embedding"].astype(jnp.float32)
    H = items_emb.shape[1]

    # --- HyperGraphConv ------------------------------------------------------
    # NOTE: the reference multiplies the ORIGINAL items_emb each layer (it never
    # reassigns items_emb inside the loop), so every layer output is identical;
    # the layer mean collapses to a two-term weighted sum (no stack in HBM).
    conv = pallas_matmul(hg_adj, items_emb)
    hg_item_emb = (items_emb + float(hg_steps) * conv) / float(hg_steps + 1)

    # --- generate_hg_emb (session attention readout) --------------------------
    zeros = jnp.zeros((1, H), jnp.float32)
    hg_padded = jnp.concatenate([zeros, hg_item_emb], axis=0)
    seq_h = hg_padded[reversed_info]                       # (B, L, H) gather (glue)
    inv_len = (1.0 / sessions_len).astype(jnp.float32)

    L = seq_h.shape[1]
    pos_emb = params["position_embedding"][:L].astype(jnp.float32)
    w1 = params["w1"]                                      # (H, 2H) torch (out, in)
    w1p = jnp.transpose(w1[:, :H])                         # pos half, (H, H)
    w1s = jnp.transpose(w1[:, H:])                         # seq half, (H, H)
    b1 = params["b1"].reshape(1, H)
    pos_w1 = pos_emb @ w1p + b1                            # hoisted (shared per batch)
    w2t = jnp.transpose(params["w2"])
    w3t = jnp.transpose(params["w3"])
    b23 = (params["b2"] + params["b3"]).reshape(1, H)      # folded bias

    hg_sess_emb = pallas_hg_attention(seq_h, pos_w1, inv_len, masks,
                                      w1s, w2t, w3t, b23, params["f_T"])

    # --- LineGraphConv ---------------------------------------------------------
    items_padded = jnp.concatenate([zeros, items_emb], axis=0)
    line_seq = items_padded[session_info]                  # (B, L, H) gather (glue)
    # padded positions gather the zero row, so a plain sum / length is exact.
    sess0 = jnp.sum(line_seq, axis=1) * inv_len[:, None]
    deg_diag = jnp.diagonal(degree)                        # degree matrix is diagonal
    line_sess_emb = pallas_line_conv(deg_diag, line_adj, sess0, line_steps)

    # --- SSL loss --------------------------------------------------------------
    # TODO(synk): torch.randperm is nondeterministic; replaced with fixed
    # permutations supplied by the caller (same semantics, deterministic).
    hg_shuffled = hg_sess_emb[perm_rows][:, perm_cols]
    cl_loss = beta * pallas_ssl_loss(hg_sess_emb, hg_shuffled, line_sess_emb)

    return hg_sess_emb, cl_loss, hg_item_emb


# ----------------------------------------------------------------------------
# Driver
# ----------------------------------------------------------------------------
if __name__ == "__main__":
    key = jax.random.PRNGKey(0)
    n_node, hidden, batch, seq_len = 32, 32, 8, 10
    hg_steps, line_steps, beta = 2, 2, 0.005

    stdv = 1.0 / math.sqrt(hidden)
    keys = jax.random.split(key, 16)
    uni = lambda k, shape: jax.random.uniform(k, shape, jnp.float32, -stdv, stdv)

    params = dict(
        items_embedding=uni(keys[0], (n_node, hidden)),
        position_embedding=uni(keys[1], (200, hidden)),
        w1=uni(keys[2], (hidden, 2 * hidden)),
        b1=uni(keys[3], (hidden,)),
        w2=uni(keys[4], (hidden, hidden)),
        b2=uni(keys[5], (hidden,)),
        w3=uni(keys[6], (hidden, hidden)),
        b3=uni(keys[7], (hidden,)),
        f_T=uni(keys[8], (hidden, 1)),
    )

    # Dense stand-in for the sparse hypergraph adjacency (row normalized).
    hg_adj = jax.random.uniform(keys[9], (n_node, n_node), jnp.float32, 0.0, 1.0)
    hg_adj = hg_adj / jnp.sum(hg_adj, axis=1, keepdims=True)

    # Padded session data: item ids in [1, n_node], 0 = padding.
    lens_int = jax.random.randint(keys[10], (batch,), 2, seq_len + 1)
    pos_idx = jnp.arange(seq_len)[None, :]
    masks = (pos_idx < lens_int[:, None]).astype(jnp.float32)
    items = jax.random.randint(keys[11], (batch, seq_len), 1, n_node + 1)
    session_info = jnp.where(masks > 0, items, 0).astype(jnp.int32)
    rev_items = jax.random.randint(keys[12], (batch, seq_len), 1, n_node + 1)
    reversed_info = jnp.where(masks > 0, rev_items, 0).astype(jnp.int32)
    sessions_len = lens_int.astype(jnp.float32)

    # Line-graph adjacency over sessions + its (inverse-)degree matrix.
    line_adj = jax.random.uniform(keys[13], (batch, batch), jnp.float32, 0.0, 1.0)
    degree = jnp.diag(1.0 / jnp.sum(line_adj, axis=1))

    # Deterministic row / column permutations for SSL negative sampling.
    perm_rows = jax.random.permutation(keys[14], batch)
    perm_cols = jax.random.permutation(keys[15], hidden)

    theta, cl_loss, hg_item_emb = dhcn_forward(
        params, session_info, reversed_info, sessions_len, masks,
        line_adj, degree, hg_adj, hg_steps, line_steps, beta,
        perm_rows, perm_cols)

    jax.block_until_ready((theta, cl_loss, hg_item_emb))
    assert theta.shape == (batch, hidden)
    assert hg_item_emb.shape == (n_node, hidden)
    assert cl_loss.shape == ()
    print("KERNEL_OK")
</pallas_src>

<mosaic_0001>
module attributes {stable_mosaic.version = 11 : i64} {
  func.func @_matmul_kernel(%arg0: i32, %arg1: i32, %arg2: i32, %arg3: memref<32x128xf32, #tpu.memory_space<vmem>>, %arg4: memref<128x128xf32, #tpu.memory_space<vmem>>, %arg5: memref<32x128xf32, #tpu.memory_space<vmem>>, %arg6: memref<32x128xf32, #tpu.memory_space<vmem>>) attributes {dimension_semantics = [#tpu.dimension_semantics<parallel>, #tpu.dimension_semantics<parallel>, #tpu.dimension_semantics<arbitrary>], iteration_bounds = array<i64: 1, 1, 1>, scalar_prefetch = 0 : i64, scratch_operands = 1 : i64, tpu.core_type = #tpu.core_type<tc>, window_params = [{transform_indices = @transform_0, window_bounds = array<i64: 32, 128>}, {transform_indices = @transform_1, window_bounds = array<i64: 128, 128>}, {transform_indices = @transform_2, window_bounds = array<i64: 32, 128>}]} {
    %c0_i32 = arith.constant 0 : i32
    %0 = arith.cmpi eq, %arg2, %c0_i32 : i32
    %1 = arith.extui %0 : i1 to i32
    %c0_i32_0 = arith.constant 0 : i32
    %2 = arith.cmpi ne, %1, %c0_i32_0 : i32
    scf.if %2 {
      %cst_10 = arith.constant 0.000000e+00 : f32
      %12 = vector.broadcast %cst_10 : f32 to vector<32x128xf32>
      %c0_11 = arith.constant 0 : index
      %c0_12 = arith.constant 0 : index
      %13 = vector.load %arg6[%c0_11, %c0_12] : memref<32x128xf32, #tpu.memory_space<vmem>>, vector<32x128xf32>
      tpu.vector_store %arg6[%c0_11, %c0_12], %12 {strides = array<i32>} : memref<32x128xf32, #tpu.memory_space<vmem>>, vector<32x128xf32>,
    } else {
    }
    %c0 = arith.constant 0 : index
    %c0_1 = arith.constant 0 : index
    %3 = vector.load %arg6[%c0, %c0_1] : memref<32x128xf32, #tpu.memory_space<vmem>>, vector<32x128xf32>
    %c0_2 = arith.constant 0 : index
    %c0_3 = arith.constant 0 : index
    %4 = vector.load %arg3[%c0_2, %c0_3] : memref<32x128xf32, #tpu.memory_space<vmem>>, vector<32x128xf32>
    %c0_4 = arith.constant 0 : index
    %c0_5 = arith.constant 0 : index
    %5 = vector.load %arg4[%c0_4, %c0_5] : memref<128x128xf32, #tpu.memory_space<vmem>>, vector<128x128xf32>
    %cst = arith.constant dense<0.000000e+00> : vector<32x128xf32>
    %6 = tpu.matmul %4, %5, %cst {dimension_numbers = #tpu.dot_dimension_numbers<[1], [0], [0], [1], [0, 0, 1, 1], [], []>} : vector<32x128xf32>, vector<128x128xf32>, vector<32x128xf32> -> vector<32x128xf32>
    %7 = arith.addf %3, %6 : vector<32x128xf32>
    %c0_6 = arith.constant 0 : index
    %c0_7 = arith.constant 0 : index
    %8 = vector.load %arg6[%c0_6, %c0_7] : memref<32x128xf32, #tpu.memory_space<vmem>>, vector<32x128xf32>
    tpu.vector_store %arg6[%c0_6, %c0_7], %7 {strides = array<i32>} : memref<32x128xf32, #tpu.memory_space<vmem>>, vector<32x128xf32>,
    %c0_i32_8 = arith.constant 0 : i32
    %9 = arith.cmpi eq, %arg2, %c0_i32_8 : i32
    %10 = arith.extui %9 : i1 to i32
    %c0_i32_9 = arith.constant 0 : i32
    %11 = arith.cmpi ne, %10, %c0_i32_9 : i32
    scf.if %11 {
      %c0_10 = arith.constant 0 : index
      %c0_11 = arith.constant 0 : index
      %12 = vector.load %arg6[%c0_10, %c0_11] : memref<32x128xf32, #tpu.memory_space<vmem>>, vector<32x128xf32>
      %c0_12 = arith.constant 0 : index
      %c0_13 = arith.constant 0 : index
      %13 = vector.load %arg5[%c0_12, %c0_13] : memref<32x128xf32, #tpu.memory_space<vmem>>, vector<32x128xf32>
      tpu.vector_store %arg5[%c0_12, %c0_13], %12 {strides = array<i32>} : memref<32x128xf32, #tpu.memory_space<vmem>>, vector<32x128xf32>,
    } else {
    }
    return
  }
  func.func @transform_0(%arg0: i32, %arg1: i32, %arg2: i32) -> (i32, i32) {
    %c0_i32 = arith.constant 0 : i32
    return %arg0, %arg2 : i32, i32
  }
  func.func @transform_1(%arg0: i32, %arg1: i32, %arg2: i32) -> (i32, i32) {
    %c0_i32 = arith.constant 0 : i32
    return %arg2, %arg1 : i32, i32
  }
  func.func @transform_2(%arg0: i32, %arg1: i32, %arg2: i32) -> (i32, i32) {
    %c0_i32 = arith.constant 0 : i32
    return %arg0, %arg1 : i32, i32
  }
}

</mosaic_0001>

<bundles_post_ra>
// kernel: tpu_custom_call.1
= control target key start
LH: loop header
LB: loop body
LE: loop exit
PB: predicated region body
PF: predicated region fallthrough
CT: control target
= control target key end

     0   :  { %7 = vsyncpa [#allocation4], 0  ;;  %s442_s0 = inlined_call_operand.hbm [shape: f32[32,128], index: 0, kind: input, shape index: {}]   ;;  %s443_s1 = inlined_call_operand.hbm [shape: f32[128,128], index: 1, kind: input, shape index: {}]   ;;  %s444_s2 = inlined_call_operand.hbm [shape: f32[32,128], index: 2, kind: output, shape index: {}]  }
   0x1   :  { %8 = vsyncpa [#allocation7], 0 }
   0x2   :  { %9 = vsyncpa [#allocation5], 0  ;;  %s377_s9 = smov [#allocation3]   ;;  %s305_s13 = scalar_lea.hbm %s442_s0, 512 }
   0x3   :  { %s15_s10 = sshll.u32 %s377_s9, 4  ;;  %p306_p0 = scmp.ne.s32.totalorder %s442_s0, %s305_s13  ;;  %s16_s10 = int_to_ptr.vmem [resolvable:$true] %s15_s10 }
   0x4   :  { %p309_p1 = scmp.lt.u32.totalorder %s305_s13, %s442_s0 }
   0x6   :  { %p311_p2 = pnand %p309_p1, %p306_p0 }
   0x8   :  { %314 = shalt.err (!%p311_p2)
}
   0x9   :  { %s315_s18 = scalar_lea.vmem %s16_s10, 512  ;;  %p320_p4 = scmp.lt.s32.totalorder %s16_s10, %s16_s10 }
   0xa   :  { %p316_p3 = scmp.ne.s32.totalorder %s16_s10, %s315_s18  ;;  %p321_p5 = scmp.lt.s32.totalorder %s315_s18, %s315_s18 }
   0xc   :  { %p322_p6 = por %p321_p5, %p320_p4 }
   0xe   :  { %p323_p7 = pnand %p322_p6, %p316_p3 }
  0x10   :  { %326 = shalt.err (!%p323_p7)
}
  0x11   :  { %s378_s19 = smov 128   ;;  %s379_s20 = smov 8  }
  0x12   :  { %21 = dma.hbm_to_vmem [thread:$0]  %s442_s0, 512, %s16_s10, [#allocation4], %s378_s19, %s378_s19, %s379_s20  }
  0x13   :  { %s380_s23 = smov [#allocation6]   ;;  %s327_s27 = scalar_lea.hbm %s443_s1, 2048 }
  0x14   :  { %s27_s24 = sshll.u32 %s380_s23, 4  ;;  %p328_p8 = scmp.ne.s32.totalorder %s443_s1, %s327_s27  ;;  %s28_s24 = int_to_ptr.vmem [resolvable:$true] %s27_s24 }
  0x15   :  { %p331_p9 = scmp.lt.u32.totalorder %s327_s27, %s443_s1 }
  0x17   :  { %p333_p10 = pnand %p331_p9, %p328_p8 }
  0x19   :  { %336 = shalt.err (!%p333_p10)
}
  0x1a   :  { %s337_s4 = scalar_lea.vmem %s28_s24, 2048  ;;  %p342_p12 = scmp.lt.s32.totalorder %s28_s24, %s28_s24 }
  0x1b   :  { %p338_p11 = scmp.ne.s32.totalorder %s28_s24, %s337_s4  ;;  %p343_p13 = scmp.lt.s32.totalorder %s337_s4, %s337_s4 }
  0x1d   :  { %p344_p0 = por %p343_p13, %p342_p12 }
  0x1f   :  { %p345_p1 = pnand %p344_p0, %p338_p11 }
  0x21   :  { %348 = shalt.err (!%p345_p1)
}
  0x22   :  { %33 = dma.hbm_to_vmem [thread:$0]  %s443_s1, 2048, %s28_s24, [#allocation7], %s378_s19, %s378_s19, %s379_s20  }
  0x23   :  { %371 = dma.done.wait [#allocation4], 512  }
  0x24   :  { %372 = vsyncadd [#allocation4], 4294966784 }
  0x25   :  { %373 = dma.done.wait [#allocation7], 2048  }
  0x26   :  { %374 = vsyncadd [#allocation7], 4294965248  ;;  %v56_v0 = vld [vmem:[#allocation6] sm:$0xff]  ;;  %v57_v1 = vld [vmem:[#allocation6 + $0x8] sm:$0xff]  ;;  %s381_s1 = smov [#allocation8]  }
  0x27   :  { %v58_v2 = vld [vmem:[#allocation6 + $0x10] sm:$0xff]  ;;  %v252_v3 = vpack.c.bf16 %v57_v1, %v56_v0  ;;  %v59_v4 = vld [vmem:[#allocation6 + $0x18] sm:$0xff]  ;;  %v60_v6 = vld [vmem:[#allocation6 + $0x20] sm:$0xff]  ;;  %s181_s6 = sshll.u32 %s381_s1, 4  ;;  %s182_s6 = int_to_ptr.vmem [resolvable:$true] %s181_s6 }
  0x28   :  { %v256_v5 = vpack.c.bf16 %v59_v4, %v58_v2  ;;  %v61_v7 = vld [vmem:[#allocation6 + $0x28] sm:$0xff]  ;;  %v52_v9 = vld [vmem:[#allocation3] sm:$0xff]  ;;  %v54_v10 = vld [vmem:[#allocation3 + $0x10] sm:$0xff]  ;;  %s349_s7 = scalar_lea.vmem %s182_s6, 512  ;;  %p354_p3 = scmp.lt.s32.totalorder %s182_s6, %s182_s6 }
  0x29   :  { %253 = vmatprep.subr.bf16.mxu0 %v252_v3  ;;  %284 = vmatprep.subr.bf16.mxu1 %v252_v3  ;;  %v260_v8 = vpack.c.bf16 %v61_v7, %v60_v6  ;;  %v62_v11 = vld [vmem:[#allocation6 + $0x30] sm:$0xff]  ;;  %v63_v12 = vld [vmem:[#allocation6 + $0x38] sm:$0xff]  ;;  %v64_v14 = vld [vmem:[#allocation6 + $0x40] sm:$0xff]  ;;  %p350_p2 = scmp.ne.s32.totalorder %s182_s6, %s349_s7  ;;  %p355_p4 = scmp.lt.s32.totalorder %s349_s7, %s349_s7 }
  0x2a   :  { %255 = vmatpush3.bf16.msra.mxu0 %v252_v3  ;;  %292 = vmatpush3.bf16.msra.mxu1 %v252_v3  ;;  %v264_v13 = vpack.c.bf16 %v63_v12, %v62_v11  ;;  %v65_v15 = vld [vmem:[#allocation6 + $0x48] sm:$0xff]  ;;  %v66_v17 = vld [vmem:[#allocation6 + $0x50] sm:$0xff]  ;;  %v67_v18 = vld [vmem:[#allocation6 + $0x58] sm:$0xff] }
  0x2b   :  { %257 = vmatprep.subr.bf16.mxu0 %v256_v5  ;;  %285 = vmatprep.subr.bf16.mxu1 %v256_v5  ;;  %v268_v16 = vpack.c.bf16 %v65_v15, %v64_v14  ;;  %v272_v19 = vpack.c.bf16 %v67_v18, %v66_v17  ;;  %v68_v20 = vld [vmem:[#allocation6 + $0x60] sm:$0xff]  ;;  %v69_v21 = vld [vmem:[#allocation6 + $0x68] sm:$0xff]  ;;  %v70_v23 = vld [vmem:[#allocation6 + $0x70] sm:$0xff]  ;;  %p356_p5 = por %p355_p4, %p354_p3 }
  0x2c   :  { %246 = vmatprep.mubr.f32.mxu0 %v52_v9  ;;  %249 = vmatprep.mubr.f32.mxu1 %v54_v10  ;;  %v276_v22 = vpack.c.bf16 %v69_v21, %v68_v20  ;;  %v71_v24 = vld [vmem:[#allocation6 + $0x78] sm:$0xff]  ;;  %v53_v26 = vld [vmem:[#allocation3 + $0x8] sm:$0xff] }
  0x2d   :  { %v280_v25 = vpack.c.bf16 %v71_v24, %v70_v23  ;;  %v55_v27 = vld [vmem:[#allocation3 + $0x18] sm:$0xff]  ;;  %p357_p6 = pnand %p356_p5, %p350_p2 }
  0x2e   :  { %259 = vmatpush3.bf16.msra.mxu0 %v256_v5  ;;  %293 = vmatpush3.bf16.msra.mxu1 %v256_v5 }
  0x2f   :  { %261 = vmatprep.subr.bf16.mxu0 %v260_v8  ;;  %286 = vmatprep.subr.bf16.mxu1 %v260_v8 }
  0x32   :  { %263 = vmatpush3.bf16.msra.mxu0 %v260_v8  ;;  %294 = vmatpush3.bf16.msra.mxu1 %v260_v8 }
  0x33   :  { %265 = vmatprep.subr.bf16.mxu0 %v264_v13  ;;  %287 = vmatprep.subr.bf16.mxu1 %v264_v13 }
  0x36   :  { %267 = vmatpush3.bf16.msra.mxu0 %v264_v13  ;;  %295 = vmatpush3.bf16.msra.mxu1 %v264_v13 }
  0x37   :  { %269 = vmatprep.subr.bf16.mxu0 %v268_v16  ;;  %288 = vmatprep.subr.bf16.mxu1 %v268_v16 }
  0x3a   :  { %271 = vmatpush3.bf16.msra.mxu0 %v268_v16  ;;  %296 = vmatpush3.bf16.msra.mxu1 %v268_v16 }
  0x3b   :  { %273 = vmatprep.subr.bf16.mxu0 %v272_v19  ;;  %289 = vmatprep.subr.bf16.mxu1 %v272_v19 }
  0x3e   :  { %275 = vmatpush3.bf16.msra.mxu0 %v272_v19  ;;  %297 = vmatpush3.bf16.msra.mxu1 %v272_v19 }
  0x3f   :  { %277 = vmatprep.subr.bf16.mxu0 %v276_v22  ;;  %290 = vmatprep.subr.bf16.mxu1 %v276_v22 }
  0x42   :  { %279 = vmatpush3.bf16.msra.mxu0 %v276_v22  ;;  %298 = vmatpush3.bf16.msra.mxu1 %v276_v22 }
  0x43   :  { %281 = vmatprep.subr.bf16.mxu0 %v280_v25  ;;  %291 = vmatprep.subr.bf16.mxu1 %v280_v25 }
  0x46   :  { %283 = vmatpush3.bf16.msra.mxu0 %v280_v25  ;;  %299 = vmatpush3.bf16.msra.mxu1 %v280_v25 }
  0x49   :  { %247 = vmatmul.mubr.f32.vlgmr.msra.gmra.mrb[0].mxu0 %v53_v26  ;;  %250 = vmatmul.mubr.f32.vlgmr.msra.gmra.mrb[0].mxu1 %v55_v27 }
 0x11c   :  { %v248_v28 = vpop.f32.mrb[0].mxu0  ;;  %v251_v29 = vpop.f32.mrb[0].mxu1 }
 0x11d   :  { %173 = vst [vmem:[#allocation8 + $0x8] sm:$0xff] %v248_v28  ;;  %175 = vst [vmem:[#allocation8 + $0x18] sm:$0xff] %v251_v29  ;;  %v138_v30 = vpop.f32.mrb[1].mxu0  ;;  %v148_v31 = vpop.f32.mrb[1].mxu1 }
 0x11e   :  { %172 = vst [vmem:[#allocation8] sm:$0xff] %v138_v30  ;;  %174 = vst [vmem:[#allocation8 + $0x10] sm:$0xff] %v148_v31 }
 0x11f   :  { %360 = shalt.err (!%p357_p6)
}
 0x120   :  { %s361_s10 = scalar_lea.hbm %s444_s2, 512 }
 0x121   :  { %p362_p7 = scmp.ne.s32.totalorder %s444_s2, %s361_s10  ;;  %p365_p8 = scmp.lt.u32.totalorder %s361_s10, %s444_s2 }
 0x123   :  { %p367_p9 = pnand %p365_p8, %p362_p7 }
 0x125   :  { %370 = shalt.err (!%p367_p9)
}
 0x126   :  { %187 = dma.vmem_to_hbm [thread:$0]  %s182_s6, 512, %s444_s2, [#allocation5], %s378_s19, %s378_s19, %s379_s20  }
 0x127   :  { %375 = dma.done.wait [#allocation5], 512  }
 0x128   :  { %376 = vsyncadd [#allocation5], 4294966784 }
 0x129   :  { %191 = vsyncpa [#allocation4], 1 }
 0x12a   :  { %192 = vsyncpa [#allocation7], 1 }
 0x12b   :  { %193 = vsyncpa [#allocation5], 1 }

</bundles_post_ra>
